<compile_context>
chip_gen: v7x
topology: tpu7x:2x2x1
jax: 0.10.0
libtpu: 0.0.40
codegen_flags: <defaults>
</compile_context>

<pallas_src>
import functools

import jax
import jax.numpy as jnp
from jax.experimental import pallas as pl
from jax.experimental.pallas import tpu as pltpu


def _hash_head_kernel(x_ref, w_attn_ref, b_attn_ref, w_fc_ref, b_fc_ref,
                      out_ref, *, eps: float):
    """One ModalityHash forward per grid step. grid axis 0: 0=img(BN), 1=txt(LN)."""
    m = pl.program_id(0)                       # modality id
    is_txt = (m == 1).astype(jnp.float32)      # 1.0 -> LayerNorm, 0.0 -> BatchNorm1d

    # Fused attention (seq_len==1): embed = x @ (Wv@Wo) + (bv@Wo + bo).
    x = x_ref[...].astype(jnp.bfloat16)
    embed = jnp.dot(x, w_attn_ref[...],
                    preferred_element_type=jnp.float32) + b_attn_ref[...]

    # Normalization: LayerNorm (feature axis) for txt, BatchNorm1d batch stats
    # (biased variance, train-mode forward) for img.  Both are trivial VPU/XLU
    # work at (B, D); compute both and blend by modality scalar.
    mu_ln = jnp.mean(embed, axis=-1, keepdims=True)
    var_ln = jnp.mean((embed - mu_ln) ** 2, axis=-1, keepdims=True)
    normed_ln = (embed - mu_ln) * jax.lax.rsqrt(var_ln + eps)

    mu_bn = jnp.mean(embed, axis=0, keepdims=True)
    var_bn = jnp.mean((embed - mu_bn) ** 2, axis=0, keepdims=True)
    normed_bn = (embed - mu_bn) * jax.lax.rsqrt(var_bn + eps)

    normed = is_txt * normed_ln + (1.0 - is_txt) * normed_bn
    # (gamma/beta affine is pre-folded into w_fc / b_fc on the host.)

    # fc2 + relu + tanh hash (tanh is elementwise; the view(B, bit, 2) is glue
    # done outside the kernel).
    h = jnp.dot(normed.astype(jnp.bfloat16), w_fc_ref[...],
                preferred_element_type=jnp.float32) + b_fc_ref[...]
    h = jnp.maximum(h, 0.0)                    # torch.relu
    # TODO(synk): tanh_hash source not provided; using DCMHT convention
    # tanh_hash(e) = tanh(e.view(B, -1, 2)) on the post-ReLU fc2 output.
    out_ref[...] = jnp.tanh(h).astype(out_ref.dtype)


@functools.partial(jax.jit, static_argnames=())
def _hash_forward(img_embeds, txt_embeds, params):
    B, D = img_embeds.shape
    two_bit = params["w_fc"].shape[-1]
    x = jnp.stack([img_embeds, txt_embeds]).astype(jnp.float32)   # (2, B, D)

    kernel = functools.partial(_hash_head_kernel, eps=1e-5)
    flat = pl.pallas_call(
        kernel,
        out_shape=jax.ShapeDtypeStruct((2, B, two_bit), jnp.float32),
        grid=(2,),
        in_specs=[
            pl.BlockSpec((None, B, D), lambda m: (m, 0, 0)),          # x
            pl.BlockSpec((None, D, D), lambda m: (m, 0, 0)),          # W_attn (bf16)
            pl.BlockSpec((None, 1, D), lambda m: (m, 0, 0)),          # b_attn
            pl.BlockSpec((None, D, two_bit), lambda m: (m, 0, 0)),    # W_fc (bf16)
            pl.BlockSpec((None, 1, two_bit), lambda m: (m, 0, 0)),    # b_fc
        ],
        out_specs=pl.BlockSpec((None, B, two_bit), lambda m: (m, 0, 0)),
        compiler_params=pltpu.CompilerParams(
            dimension_semantics=("parallel",)),
    )(x, params["w_attn"], params["b_attn"], params["w_fc"], params["b_fc"])

    bit = two_bit // 2
    img_hash = flat[0].reshape(B, bit, 2)      # == embed.view(B, bit, 2)
    txt_hash = flat[1].reshape(B, bit, 2)
    return img_hash, txt_hash


def _init_modality_params(key, D, bit):
    """Synthetic init matching the torch module's shapes, with host-side fusion."""
    ks = jax.random.split(key, 3)
    # MultiheadAttention: in_proj_weight (3D, D), in_proj_bias (3D,)==0,
    # out_proj.weight (D, D), out_proj.bias (D,)==0.
    in_proj_w = jax.random.normal(ks[0], (3 * D, D), jnp.float32) / jnp.sqrt(D)
    in_proj_b = jnp.zeros((3 * D,), jnp.float32)
    w_v = in_proj_w[2 * D:3 * D].T                     # (D, D), used as x @ w_v
    b_v = in_proj_b[2 * D:3 * D].reshape(1, D)
    out_w = jax.random.normal(ks[1], (D, D), jnp.float32) / jnp.sqrt(D)
    w_o = out_w.T                                      # (D, D)
    b_o = jnp.zeros((1, D), jnp.float32)
    # seq_len==1 attention == out_proj(v_proj(x)):  fuse the two projections.
    w_attn = w_v @ w_o                                 # (D, D)
    b_attn = b_v @ w_o + b_o                           # (1, D)

    # Norm affine (PyTorch default: weight=1, bias=0) folded into fc2.
    gamma = jnp.ones((1, D), jnp.float32)
    beta = jnp.zeros((1, D), jnp.float32)
    # fc2: Linear(D, 2*bit) with kaiming-style deterministic init.
    fc_w = jax.random.normal(ks[2], (2 * bit, D), jnp.float32) * jnp.sqrt(2.0 / D)
    fc_b = jnp.zeros((2 * bit,), jnp.float32)
    w_fc = fc_w.T                                      # (D, 2*bit)
    w_fc_folded = gamma.reshape(D, 1) * w_fc           # diag(gamma) @ W_fc
    b_fc_folded = beta @ w_fc + fc_b.reshape(1, 2 * bit)

    return dict(w_attn=w_attn, b_attn=b_attn, w_fc=w_fc_folded, b_fc=b_fc_folded)


class HashLayerPallas:
    """HashLayer: img head uses BatchNorm1d, txt head uses LayerNorm."""

    def __init__(self, key, feature_size=128, outputDim=64, num_heads=8):
        assert feature_size % num_heads == 0
        ki, kt = jax.random.split(key)
        img = _init_modality_params(ki, feature_size, outputDim)
        txt = _init_modality_params(kt, feature_size, outputDim)
        # Stack modalities along a leading axis; matmul weights stored in bf16
        # (MXU operands); biases stay f32 (added after the f32 accumulate).
        self.params = dict(
            w_attn=jnp.stack([img["w_attn"], txt["w_attn"]]).astype(jnp.bfloat16),
            b_attn=jnp.stack([img["b_attn"], txt["b_attn"]]),
            w_fc=jnp.stack([img["w_fc"], txt["w_fc"]]).astype(jnp.bfloat16),
            b_fc=jnp.stack([img["b_fc"], txt["b_fc"]]),
        )
        # TODO(synk): torch BatchNorm1d train-mode running_mean/var updates are
        # side effects not reproduced here (inference-style forward only).

    def __call__(self, img_embeds, txt_embeds):
        return _hash_forward(img_embeds, txt_embeds, self.params)


if __name__ == "__main__":
    key = jax.random.PRNGKey(0)
    kp, ki, kt = jax.random.split(key, 3)
    B, D, BIT, HEADS = 8, 128, 64, 8        # small but (8,128)-aligned shapes
    layer = HashLayerPallas(kp, feature_size=D, outputDim=BIT, num_heads=HEADS)
    img_embeds = jax.random.normal(ki, (B, D), jnp.float32)
    txt_embeds = jax.random.normal(kt, (B, D), jnp.float32)
    img_hash, txt_hash = layer(img_embeds, txt_embeds)
    jax.block_until_ready((img_hash, txt_hash))
    assert img_hash.shape == (B, BIT, 2) and txt_hash.shape == (B, BIT, 2)
    assert bool(jnp.all(jnp.isfinite(img_hash))) and bool(jnp.all(jnp.isfinite(txt_hash)))
    print("KERNEL_OK")
</pallas_src>

<mosaic_0001>
module attributes {stable_mosaic.version = 11 : i64} {
  func.func @_hash_head_kernel(%arg0: i32, %arg1: memref<1x8x128xf32, #tpu.memory_space<vmem>>, %arg2: memref<1x128x128xbf16, #tpu.memory_space<vmem>>, %arg3: memref<1x1x128xf32, #tpu.memory_space<vmem>>, %arg4: memref<1x128x128xbf16, #tpu.memory_space<vmem>>, %arg5: memref<1x1x128xf32, #tpu.memory_space<vmem>>, %arg6: memref<1x8x128xf32, #tpu.memory_space<vmem>>) attributes {dimension_semantics = [#tpu.dimension_semantics<parallel>], iteration_bounds = array<i64: 2>, scalar_prefetch = 0 : i64, scratch_operands = 0 : i64, tpu.core_type = #tpu.core_type<tc>, window_params = [{transform_indices = @transform_0, window_bounds = array<i64: 1, 8, 128>}, {transform_indices = @transform_1, window_bounds = array<i64: 1, 128, 128>}, {transform_indices = @transform_2, window_bounds = array<i64: 1, 1, 128>}, {transform_indices = @transform_3, window_bounds = array<i64: 1, 128, 128>}, {transform_indices = @transform_4, window_bounds = array<i64: 1, 1, 128>}, {transform_indices = @transform_5, window_bounds = array<i64: 1, 8, 128>}]} {
    %c1_i32 = arith.constant 1 : i32
    %0 = arith.cmpi eq, %arg0, %c1_i32 : i32
    %1 = arith.extui %0 : i1 to i32
    %2 = arith.sitofp %1 : i32 to f32
    %c0 = arith.constant 0 : index
    %c0_0 = arith.constant 0 : index
    %c0_1 = arith.constant 0 : index
    %3 = vector.load %arg1[%c0, %c0_0, %c0_1] : memref<1x8x128xf32, #tpu.memory_space<vmem>>, vector<1x8x128xf32>
    %4 = vector.shape_cast %3 : vector<1x8x128xf32> to vector<8x128xf32>
    %5 = arith.truncf %4 : vector<8x128xf32> to vector<8x128xbf16>
    %c0_2 = arith.constant 0 : index
    %c0_3 = arith.constant 0 : index
    %c0_4 = arith.constant 0 : index
    %6 = vector.load %arg2[%c0_2, %c0_3, %c0_4] : memref<1x128x128xbf16, #tpu.memory_space<vmem>>, vector<1x128x128xbf16>
    %7 = vector.shape_cast %6 : vector<1x128x128xbf16> to vector<128x128xbf16>
    %cst = arith.constant dense<0.000000e+00> : vector<8x128xf32>
    %8 = tpu.matmul %5, %7, %cst {dimension_numbers = #tpu.dot_dimension_numbers<[1], [0], [0], [1], [0, 0, 1, 1], [], []>} : vector<8x128xbf16>, vector<128x128xbf16>, vector<8x128xf32> -> vector<8x128xf32>
    %c0_5 = arith.constant 0 : index
    %c0_6 = arith.constant 0 : index
    %c0_7 = arith.constant 0 : index
    %9 = vector.load %arg3[%c0_5, %c0_6, %c0_7] : memref<1x1x128xf32, #tpu.memory_space<vmem>>, vector<1x1x128xf32>
    %10 = vector.shape_cast %9 : vector<1x1x128xf32> to vector<1x128xf32>
    %11 = vector.broadcast %10 : vector<1x128xf32> to vector<8x128xf32>
    %12 = arith.addf %8, %11 : vector<8x128xf32>
    %cst_8 = arith.constant dense<0.000000e+00> : vector<8xf32>
    %13 = vector.multi_reduction <add>, %12, %cst_8 [1] : vector<8x128xf32> to vector<8xf32>
    %14 = vector.shape_cast %13 : vector<8xf32> to vector<8x1xf32>
    %cst_9 = arith.constant 1.280000e+02 : f32
    %15 = vector.broadcast %cst_9 : f32 to vector<8x1xf32>
    %16 = arith.divf %14, %15 : vector<8x1xf32>
    %17 = vector.broadcast %16 : vector<8x1xf32> to vector<8x128xf32>
    %18 = arith.subf %12, %17 : vector<8x128xf32>
    %19 = arith.mulf %18, %18 : vector<8x128xf32>
    %cst_10 = arith.constant dense<0.000000e+00> : vector<8xf32>
    %20 = vector.multi_reduction <add>, %19, %cst_10 [1] : vector<8x128xf32> to vector<8xf32>
    %21 = vector.shape_cast %20 : vector<8xf32> to vector<8x1xf32>
    %cst_11 = arith.constant 1.280000e+02 : f32
    %22 = vector.broadcast %cst_11 : f32 to vector<8x1xf32>
    %23 = arith.divf %21, %22 : vector<8x1xf32>
    %24 = vector.broadcast %16 : vector<8x1xf32> to vector<8x128xf32>
    %25 = arith.subf %12, %24 : vector<8x128xf32>
    %cst_12 = arith.constant 9.99999974E-6 : f32
    %26 = vector.broadcast %cst_12 : f32 to vector<8x1xf32>
    %27 = arith.addf %23, %26 : vector<8x1xf32>
    %28 = math.rsqrt %27 : vector<8x1xf32>
    %29 = vector.broadcast %28 : vector<8x1xf32> to vector<8x128xf32>
    %30 = arith.mulf %25, %29 : vector<8x128xf32>
    %cst_13 = arith.constant dense<0.000000e+00> : vector<128xf32>
    %31 = vector.multi_reduction <add>, %12, %cst_13 [0] : vector<8x128xf32> to vector<128xf32>
    %32 = vector.shape_cast %31 : vector<128xf32> to vector<1x128xf32>
    %cst_14 = arith.constant 8.000000e+00 : f32
    %33 = vector.broadcast %cst_14 : f32 to vector<1x128xf32>
    %34 = arith.divf %32, %33 : vector<1x128xf32>
    %35 = vector.broadcast %34 : vector<1x128xf32> to vector<8x128xf32>
    %36 = arith.subf %12, %35 : vector<8x128xf32>
    %37 = arith.mulf %36, %36 : vector<8x128xf32>
    %cst_15 = arith.constant dense<0.000000e+00> : vector<128xf32>
    %38 = vector.multi_reduction <add>, %37, %cst_15 [0] : vector<8x128xf32> to vector<128xf32>
    %39 = vector.shape_cast %38 : vector<128xf32> to vector<1x128xf32>
    %cst_16 = arith.constant 8.000000e+00 : f32
    %40 = vector.broadcast %cst_16 : f32 to vector<1x128xf32>
    %41 = arith.divf %39, %40 : vector<1x128xf32>
    %42 = vector.broadcast %34 : vector<1x128xf32> to vector<8x128xf32>
    %43 = arith.subf %12, %42 : vector<8x128xf32>
    %cst_17 = arith.constant 9.99999974E-6 : f32
    %44 = vector.broadcast %cst_17 : f32 to vector<1x128xf32>
    %45 = arith.addf %41, %44 : vector<1x128xf32>
    %46 = math.rsqrt %45 : vector<1x128xf32>
    %47 = vector.broadcast %46 : vector<1x128xf32> to vector<8x128xf32>
    %48 = arith.mulf %43, %47 : vector<8x128xf32>
    %49 = vector.broadcast %2 : f32 to vector<8x128xf32>
    %50 = arith.mulf %49, %30 : vector<8x128xf32>
    %cst_18 = arith.constant 1.000000e+00 : f32
    %51 = arith.subf %cst_18, %2 : f32
    %52 = vector.broadcast %51 : f32 to vector<8x128xf32>
    %53 = arith.mulf %52, %48 : vector<8x128xf32>
    %54 = arith.addf %50, %53 : vector<8x128xf32>
    %55 = arith.truncf %54 : vector<8x128xf32> to vector<8x128xbf16>
    %c0_19 = arith.constant 0 : index
    %c0_20 = arith.constant 0 : index
    %c0_21 = arith.constant 0 : index
    %56 = vector.load %arg4[%c0_19, %c0_20, %c0_21] : memref<1x128x128xbf16, #tpu.memory_space<vmem>>, vector<1x128x128xbf16>
    %57 = vector.shape_cast %56 : vector<1x128x128xbf16> to vector<128x128xbf16>
    %cst_22 = arith.constant dense<0.000000e+00> : vector<8x128xf32>
    %58 = tpu.matmul %55, %57, %cst_22 {dimension_numbers = #tpu.dot_dimension_numbers<[1], [0], [0], [1], [0, 0, 1, 1], [], []>} : vector<8x128xbf16>, vector<128x128xbf16>, vector<8x128xf32> -> vector<8x128xf32>
    %c0_23 = arith.constant 0 : index
    %c0_24 = arith.constant 0 : index
    %c0_25 = arith.constant 0 : index
    %59 = vector.load %arg5[%c0_23, %c0_24, %c0_25] : memref<1x1x128xf32, #tpu.memory_space<vmem>>, vector<1x1x128xf32>
    %60 = vector.shape_cast %59 : vector<1x1x128xf32> to vector<1x128xf32>
    %61 = vector.broadcast %60 : vector<1x128xf32> to vector<8x128xf32>
    %62 = arith.addf %58, %61 : vector<8x128xf32>
    %cst_26 = arith.constant 0.000000e+00 : f32
    %63 = vector.broadcast %cst_26 : f32 to vector<8x128xf32>
    %64 = arith.maximumf %62, %63 : vector<8x128xf32>
    %65 = math.tanh %64 : vector<8x128xf32>
    %c0_27 = arith.constant 0 : index
    %c0_28 = arith.constant 0 : index
    %c0_29 = arith.constant 0 : index
    %66 = vector.load %arg6[%c0_27, %c0_28, %c0_29] : memref<1x8x128xf32, #tpu.memory_space<vmem>>, vector<1x8x128xf32>
    %67 = vector.shape_cast %66 : vector<1x8x128xf32> to vector<8x128xf32>
    %68 = vector.shape_cast %65 : vector<8x128xf32> to vector<1x8x128xf32>
    tpu.vector_store %arg6[%c0_27, %c0_28, %c0_29], %68 {strides = array<i32>} : memref<1x8x128xf32, #tpu.memory_space<vmem>>, vector<1x8x128xf32>,
    return
  }
  func.func @transform_0(%arg0: i32) -> (i32, i32, i32) {
    %c0_i32 = arith.constant 0 : i32
    %c0_i32_0 = arith.constant 0 : i32
    %c0_i32_1 = arith.constant 0 : i32
    return %arg0, %c0_i32, %c0_i32_0 : i32, i32, i32
  }
  func.func @transform_1(%arg0: i32) -> (i32, i32, i32) {
    %c0_i32 = arith.constant 0 : i32
    %c0_i32_0 = arith.constant 0 : i32
    %c0_i32_1 = arith.constant 0 : i32
    return %arg0, %c0_i32, %c0_i32_0 : i32, i32, i32
  }
  func.func @transform_2(%arg0: i32) -> (i32, i32, i32) {
    %c0_i32 = arith.constant 0 : i32
    %c0_i32_0 = arith.constant 0 : i32
    %c0_i32_1 = arith.constant 0 : i32
    return %arg0, %c0_i32, %c0_i32_0 : i32, i32, i32
  }
  func.func @transform_3(%arg0: i32) -> (i32, i32, i32) {
    %c0_i32 = arith.constant 0 : i32
    %c0_i32_0 = arith.constant 0 : i32
    %c0_i32_1 = arith.constant 0 : i32
    return %arg0, %c0_i32, %c0_i32_0 : i32, i32, i32
  }
  func.func @transform_4(%arg0: i32) -> (i32, i32, i32) {
    %c0_i32 = arith.constant 0 : i32
    %c0_i32_0 = arith.constant 0 : i32
    %c0_i32_1 = arith.constant 0 : i32
    return %arg0, %c0_i32, %c0_i32_0 : i32, i32, i32
  }
  func.func @transform_5(%arg0: i32) -> (i32, i32, i32) {
    %c0_i32 = arith.constant 0 : i32
    %c0_i32_0 = arith.constant 0 : i32
    %c0_i32_1 = arith.constant 0 : i32
    return %arg0, %c0_i32, %c0_i32_0 : i32, i32, i32
  }
}

</mosaic_0001>

<bundles_post_ra>
// kernel: _hash_forward.1
= control target key start
LH: loop header
LB: loop body
LE: loop exit
PB: predicated region body
PF: predicated region fallthrough
CT: control target
= control target key end

     0   :  { %10 = vsyncpa [#allocation3], 0  ;;  %s1241_s0 = inlined_call_operand.vmem [shape: f32[2,8,128], index: 0, kind: input, shape index: {}]   ;;  %s1242_s1 = inlined_call_operand.hbm [shape: bf16[2,128,128], index: 1, kind: input, shape index: {}]   ;;  %s1243_s2 = inlined_call_operand.vmem [shape: f32[2,1,128], index: 2, kind: input, shape index: {}]   ;;  %s1244_s3 = inlined_call_operand.hbm [shape: bf16[2,128,128], index: 3, kind: input, shape index: {}]   ;;  %s1245_s4 = inlined_call_operand.vmem [shape: f32[2,1,128], index: 4, kind: input, shape index: {}]   ;;  %s1246_s5 = inlined_call_operand.vmem [shape: f32[2,8,128], index: 5, kind: output, shape index: {}]  }
   0x1   :  { %12 = vsyncpa [#allocation3 + $0x1], 0 }
   0x2   :  { %13 = vsyncpa [#allocation5], 0 }
   0x3   :  { %15 = vsyncpa [#allocation5 + $0x1], 0  ;;  %s1016_s18 = smov 0   ;;  %s1018_s19 = smov 0  }
   0x4   :  { %s1020_s20 = smov 0   ;;  %s1022_s21 = smov 0  }
   0x5 LB: > { %s1035_s22 = sadd.s32 4294967295, %s978_s21   ;;  %s1038_s23 = sadd.s32 1, %s978_s21   ;;  %s978_s21 = sphi %s1022_s21, %s1256_s21   ;;  %s974_s20 = sphi %s1020_s20, %s1255_s20   ;;  %s970_s19 = sphi %s1018_s19, %s1254_s19   ;;  %s966_s18 = sphi %s1016_s18, %s1253_s18  }
   0x6   : > { %s51_s24 = ssub.s32 %s978_s21, %s1038_s23  ;;  %s54_s25 = sadd.s32 1, %s974_s20 }
   0x7   : > { %p52_p0 = scmp.eq.s32.totalorder %s51_s24, 0  ;;  %p61_p1 = scmp.ne.s32.totalorder %s974_s20, %s970_s19 }
   0x8   : > { %p62_p2 = scmp.eq.s32.totalorder %s978_s21, 0  ;;  %p67_p3 = scmp.ne.s32.totalorder %s970_s19, %s966_s18 }
   0x9   : > { %s1048_s26 = scalar_select %p52_p0, %s974_s20, %s54_s25  }
   0xa   : > { %p63_p4 = por %p62_p2, %p61_p1  ;;  %p68_p5 = scmp.eq.s32.totalorder %s1035_s22, 0 }
   0xb   : > { %p821_p6 = scmp.lt.s32.totalorder %s978_s21, 2  ;;  %s1057_s28 = sand.u32 1, %s974_s20  }
   0xc   : > { %p1052_p7 = por %p68_p5, %p67_p3  ;;  %s719_s29 = sshll.u32 %s1057_s28, 6 }
   0xd   : > { %s750_s30 = sshll.u32 %s978_s21, 10  ;;  %s206_s9 = scalar_lea.vmem [#allocation2], %s719_s29 }
   0xe   : > { %s1248_s27 = scalar_select %p1052_p7, 1, 0 }
   0xf   : > { %s1066_s8 = scalar_lea.hbm %s1242_s1, %s750_s30  ;;  %s213_s10 = sshll.u32 %s206_s9, 4  ;;  %s1070_s10 = int_to_ptr.vmem [resolvable:$true] %s213_s10 }
  0x10   : > { %p1072_p8 = pnand %p821_p6, %p63_p4  ;;  %s203_s12 = scalar_lea.sflag [#allocation3], %s1057_s28 }
  0x11   : > { %s880_s13 = scalar_lea.hbm %s1066_s8, 1024  ;;  %s885_s16 = scalar_lea.hbm %s1242_s1, 2048 }
  0x12   : > { %p881_p10 = scmp.ne.s32.totalorder %s1066_s8, %s880_s13  ;;  %p882_p11 = pneg %p1072_p8 }
  0x13   : > { %p886_p0 = scmp.lt.u32.totalorder %s1066_s8, %s1242_s1  ;;  %p887_p1 = scmp.lt.u32.totalorder %s885_s16, %s880_s13 }
  0x14   : > { %p883_p12 = pnand %p882_p11, %p881_p10  ;;  %p889_p3 = scmp.lt.u32.totalorder %s880_s13, %s1066_s8 }
  0x15   : > { %p888_p2 = por %p887_p1, %p886_p0 }
  0x16   : > { %p884_p13 = pneg %p883_p12 }
  0x17   : > { %p890_p4 = por %p889_p3, %p888_p2 }
  0x19   : > { %p891_p5 = pnand %p890_p4, %p884_p13 }
  0x1b   : > { %894 = shalt.err (!%p891_p5)
}
  0x1c   : > { %s895_s24 = scalar_lea.vmem %s1070_s10, 1024  ;;  %s980_s25 = smov [#allocation2]  }
  0x1d   : > { %p896_p6 = scmp.ne.s32.totalorder %s1070_s10, %s895_s24  ;;  %s900_s6 = sshll.u32 %s980_s25, 4  ;;  %s901_s6 = int_to_ptr.vmem [resolvable:$false] %s900_s6 }
  0x1e   : > { %s902_s7 = scalar_lea.vmem %s901_s6, 2048  ;;  %p903_p9 = scmp.lt.s32.totalorder %s1070_s10, %s901_s6 }
  0x1f   : > { %p898_p10 = pnand %p896_p6, %p882_p11  ;;  %p904_p0 = scmp.lt.s32.totalorder %s902_s7, %s895_s24 }
  0x21   : > { %p899_p12 = pneg %p898_p10  ;;  %p905_p1 = por %p904_p0, %p903_p9 }
  0x23   : > { %p906_p2 = pnand %p905_p1, %p899_p12 }
  0x25   : > { %909 = shalt.err (!%p906_p2)
}
  0x26   : > { %s981_s9 = smov 64   ;;  %s982_s13 = smov 4  }
  0x27   : > { %817 = dma.hbm_to_vmem [thread:$0]  (!%p1072_p8), %s1066_s8, 1024, %s1070_s10, %s203_s12, %s981_s9, %s981_s9, %s982_s13  }
  0x28   : > { %p254_p9 = scmp.lt.s32.totalorder %s978_s21, 3  ;;  %s1114_s16 = scalar_lea.hbm %s1244_s3, %s750_s30 }
  0x29   : > { %p1250_p13 = scmp.ge.s32.totalorder %s978_s21, 1  ;;  %s233_s18 = scalar_lea.vmem [#allocation4], %s719_s29 }
  0x2a   : > { %s240_s24 = sshll.u32 %s233_s18, 4  ;;  %s230_s8 = scalar_lea.sflag [#allocation5], %s1057_s28  ;;  %s1124_s24 = int_to_ptr.vmem [resolvable:$true] %s240_s24 }
  0x2b   : > { %p1118_p3 = pnand %p1250_p13, %p254_p9  ;;  %s910_s10 = scalar_lea.hbm %s1114_s16, 1024 }
  0x2c   : > { %p911_p4 = scmp.ne.s32.totalorder %s1114_s16, %s910_s10  ;;  %s915_s12 = scalar_lea.hbm %s1244_s3, 2048 }
  0x2d   : > { %p916_p10 = scmp.lt.u32.totalorder %s1114_s16, %s1244_s3  ;;  %p917_p12 = scmp.lt.u32.totalorder %s915_s12, %s910_s10 }
  0x2e   : > { %p913_p5 = pnand %p911_p4, %p882_p11  ;;  %p919_p1 = scmp.lt.u32.totalorder %s910_s10, %s1114_s16 }
  0x2f   : > { %p918_p0 = por %p917_p12, %p916_p10 }
  0x30   : > { %p914_p6 = pneg %p913_p5 }
  0x31   : > { %p920_p2 = por %p919_p1, %p918_p0 }
  0x33   : > { %p921_p9 = pnand %p920_p2, %p914_p6 }
  0x35   : > { %924 = shalt.err (!%p921_p9)
}
  0x36   : > { %s925_s29 = scalar_lea.vmem %s1124_s24, 1024  ;;  %s983_s7 = smov [#allocation4]  }
  0x37   : > { %p926_p13 = scmp.ne.s32.totalorder %s1124_s24, %s925_s29  ;;  %s930_s14 = sshll.u32 %s983_s7, 4  ;;  %s931_s14 = int_to_ptr.vmem [resolvable:$false] %s930_s14 }
  0x38   : > { %s932_s15 = scalar_lea.vmem %s931_s14, 2048  ;;  %p933_p7 = scmp.lt.s32.totalorder %s1124_s24, %s931_s14 }
  0x39   : > { %p928_p4 = pnand %p926_p13, %p882_p11  ;;  %p934_p10 = scmp.lt.s32.totalorder %s932_s15, %s925_s29 }
  0x3b   : > { %p929_p5 = pneg %p928_p4  ;;  %p935_p12 = por %p934_p10, %p933_p7 }
  0x3d   : > { %p936_p0 = pnand %p935_p12, %p929_p5 }
  0x3f   : > { %939 = shalt.err (!%p936_p0)
}
  0x40   : > { %820 = dma.hbm_to_vmem [thread:$0]  (!%p1072_p8), %s1114_s16, 1024, %s1124_s24, %s230_s8, %s981_s9, %s981_s9, %s982_s13  }
  0x41   : > { %258 = sbr.rel (%p1118_p3) target bundleno = 864 (0x360), region = 40  ;;  %s260_s18 = sand.u32 (!%p1118_p3), 1, %s970_s19  }
  0x42   : > { %s726_s10 = sshll.u32 (!%p1118_p3), %s260_s18, 6  ;;  %s261_s21 = scalar_lea.sflag (!%p1118_p3), [#allocation3], %s260_s18 }
  0x43   : > { %s1158_s30 = scalar_lea.vmem (!%p1118_p3), [#allocation2], %s726_s10  ;;  %p1252_p7 = scmp.ne.s32.totalorder (!%p1118_p3), %s1248_s27, 0 }
  0x48   : > { %957 = dma.done.wait (%p1252_p7), %s261_s21, 1024  }
  0x49   : > { %959 = vsyncadd (%p1252_p7), %s261_s21, 4294966272  ;;  %s270_s28 = scalar_lea.sflag [#allocation5], %s260_s18  ;;  %s1164_s11 = scalar_lea.vmem [#allocation4], %s726_s10 }
  0x4a   : > { %961 = dma.done.wait (%p1252_p7), %s270_s28, 1024  }
  0x4b   : > { %963 = vsyncadd (%p1252_p7), %s270_s28, 4294966272  ;;  %v984_v0 = vmov 0.0   ;;  %vm985_vm0 = vmmov 0   ;;  %v858_v1 = vld [vmem:[%s1158_s30] sm:$0xff]   ;;  %v859_v2 = vld [vmem:[%s1158_s30 + $0x8] sm:$0xff]   ;;  %p314_p8 = scmp.lt.s32.totalorder %s1035_s22, 1 }
  0x4c   : > { %770 = vmatprep.subr.bf16.mxu0 %v984_v0  ;;  %786 = vmatprep.mubr.msk.bf16.mxu0 %vm985_vm0, %v984_v0  ;;  %v860_v3 = vld [vmem:[%s1158_s30 + $0x10] sm:$0xff]   ;;  %v861_v4 = vld [vmem:[%s1158_s30 + $0x18] sm:$0xff]   ;;  %v862_v5 = vld [vmem:[%s1158_s30 + $0x20] sm:$0xff]   ;;  %p329_p11 = scmp.eq.s32.totalorder %s1035_s22, 1 }
  0x4d   : > { %790 = vmatprep.subr.bf16.mxu1 %v984_v0  ;;  %806 = vmatprep.mubr.msk.bf16.mxu1 %vm985_vm0, %v984_v0  ;;  %s1185_s27 = scalar_select %p314_p8, %s1035_s22, 1  ;;  %v863_v6 = vld [vmem:[%s1158_s30 + $0x28] sm:$0xff]   ;;  %v864_v7 = vld [vmem:[%s1158_s30 + $0x30] sm:$0xff]   ;;  %v865_v8 = vld [vmem:[%s1158_s30 + $0x38] sm:$0xff]  }
  0x4e   : > { %771 = vmatpush3.bf16.msra.mxu0 %v858_v1  ;;  %v866_v17 = vld [vmem:[%s1164_s11] sm:$0xff]   ;;  %v867_v18 = vld [vmem:[%s1164_s11 + $0x8] sm:$0xff]   ;;  %v868_v23 = vld [vmem:[%s1164_s11 + $0x10] sm:$0xff]   ;;  %s330_s25 = scalar_select %p329_p11, 1, 0 }
  0x4f   : > { %772 = vmatprep.subr.bf16.mxu0 %v984_v0  ;;  %s728_s9 = sshll.u32 %s1185_s27, 3  ;;  %s320_s12 = scalar_lea.vmem %s1243_s2, %s1185_s27  ;;  %791 = vmatpush3.bf16.msra.mxu1 %v866_v17  ;;  %v869_v24 = vld [vmem:[%s1164_s11 + $0x18] sm:$0xff]   ;;  %v870_v25 = vld [vmem:[%s1164_s11 + $0x20] sm:$0xff]   ;;  %v871_v26 = vld [vmem:[%s1164_s11 + $0x28] sm:$0xff]  }
  0x50   : > { %s317_s17 = scalar_lea.vmem %s1241_s0, %s728_s9  ;;  %v730_v11 = vld [vmem:[%s320_s12] ss:$0 sm:$0xff]  ;;  %792 = vmatprep.subr.bf16.mxu1 %v984_v0  ;;  %v872_v27 = vld [vmem:[%s1164_s11 + $0x30] sm:$0xff]   ;;  %v873_v28 = vld [vmem:[%s1164_s11 + $0x38] sm:$0xff]   ;;  %s331_s6 = scvt.s32.f32 %s330_s25 }
  0x51   : > { %v332_v9 = vld [vmem:[%s317_s17] sm:$0xff]  ;;  %s323_s14 = scalar_lea.vmem %s1245_s4, %s1185_s27  ;;  %s327_s10 = scalar_lea.vmem %s1246_s5, %s728_s9 }
  0x52   : > { %773 = vmatpush3.bf16.msra.mxu0 %v859_v2  ;;  %v333_v10 = vpack.c.bf16 %v332_v9, %v332_v9  ;;  %s479_s29 = ssub.f32 1.0, %s331_s6  ;;  %v477_v52 = vstv %s331_s6  ;;  %v739_v59 = vld [vmem:[%s323_s14] ss:$0 sm:$0xff] }
  0x53   : > { %774 = vmatprep.subr.bf16.mxu0 %v984_v0  ;;  %793 = vmatpush3.bf16.msra.mxu1 %v867_v18 }
  0x54   : > { %794 = vmatprep.subr.bf16.mxu1 %v984_v0  ;;  %v480_v53 = vstv %s479_s29 }
  0x56   : > { %775 = vmatpush3.bf16.msra.mxu0 %v860_v3 }
  0x57   : > { %776 = vmatprep.subr.bf16.mxu0 %v984_v0  ;;  %795 = vmatpush3.bf16.msra.mxu1 %v868_v23 }
  0x58   : > { %796 = vmatprep.subr.bf16.mxu1 %v984_v0 }
  0x5a   : > { %777 = vmatpush3.bf16.msra.mxu0 %v861_v4 }
  0x5b   : > { %778 = vmatprep.subr.bf16.mxu0 %v984_v0  ;;  %797 = vmatpush3.bf16.msra.mxu1 %v869_v24 }
  0x5c   : > { %798 = vmatprep.subr.bf16.mxu1 %v984_v0 }
  0x5e   : > { %779 = vmatpush3.bf16.msra.mxu0 %v862_v5 }
  0x5f   : > { %780 = vmatprep.subr.bf16.mxu0 %v984_v0  ;;  %799 = vmatpush3.bf16.msra.mxu1 %v870_v25 }
  0x60   : > { %800 = vmatprep.subr.bf16.mxu1 %v984_v0 }
  0x62   : > { %781 = vmatpush3.bf16.msra.mxu0 %v863_v6 }
  0x63   : > { %782 = vmatprep.subr.bf16.mxu0 %v984_v0  ;;  %801 = vmatpush3.bf16.msra.mxu1 %v871_v26 }
  0x64   : > { %802 = vmatprep.subr.bf16.mxu1 %v984_v0 }
  0x66   : > { %783 = vmatpush3.bf16.msra.mxu0 %v864_v7 }
  0x67   : > { %784 = vmatprep.subr.bf16.mxu0 %v984_v0  ;;  %803 = vmatpush3.bf16.msra.mxu1 %v872_v27 }
  0x68   : > { %804 = vmatprep.subr.bf16.mxu1 %v984_v0 }
  0x6a   : > { %785 = vmatpush3.bf16.msra.mxu0 %v865_v8 }
  0x6b   : > { %805 = vmatpush3.bf16.msra.mxu1 %v873_v28 }
  0x6d   : > { %787 = vmatmul.mubr.bf16.vlgmr.msra.gmra.mrb[0].mxu0 %v333_v10 }
 0x140   : > { %v439_v12 = vpop.f32.mrb[0].mxu0 }
 0x141   : > { %v440_v13 = vadd.f32 %v730_v11, %v439_v12  ;;  %v788_v14 = vpop.f32.mrb[1].mxu0 }
 0x142   : > { %v442_v15 = vpop.f32.mrb[2].mxu0 }
 0x143   : > { %445 = vadd.xlane.f32.xlu0 %v440_v13  ;;  %v789_v16 = vpop.f32.mrb[3].mxu0  ;;  %v457_v29 = vrot.slane %v440_v13, 4 }
 0x145   : > { %v458_v30 = vadd.f32 %v457_v29, %v440_v13 }
 0x147   : > { %v459_v31 = vrot.slane %v458_v30, 2 }
 0x149   : > { %v460_v32 = vadd.f32 %v459_v31, %v458_v30 }
 0x14b   : > { %v461_v33 = vrot.slane %v460_v32, 1 }
 0x14d   : > { %v462_v34 = vadd.f32 %v461_v33, %v460_v32 }
 0x14f   : > { %v464_v35 = vmul.f32 0.125, %v462_v34 }
 0x151   : > { %v465_v36 = vsub.f32 %v440_v13, %v464_v35 }
 0x153   : > { %v466_v37 = vmul.f32 %v465_v36, %v465_v36 }
 0x155   : > { %v467_v38 = vrot.slane %v466_v37, 4 }
 0x157   : > { %v468_v39 = vadd.f32 %v467_v38, %v466_v37 }
 0x159   : > { %v469_v40 = vrot.slane %v468_v39, 2 }
 0x15b   : > { %v470_v41 = vadd.f32 %v469_v40, %v468_v39 }
 0x15d   : > { %v471_v42 = vrot.slane %v470_v41, 1 }
 0x15f   : > { %v472_v43 = vadd.f32 %v471_v42, %v470_v41 }
 0x161   : > { %v473_v44 = vmul.f32 0.125, %v472_v43 }
 0x163   : > { %v474_v45 = vadd.f32 1e-05, %v473_v44 }
 0x165   : > { %874 = vrsqrt.f32 %v474_v45 }
 0x16f   : > { %v875_v49 = vpop.eup %874 }
 0x170   : > { %v476_v50 = vmul.f32 %v875_v49, %v465_v36 }
 0x172   : > { %v481_v56 = vmul.f32 %v480_v53, %v476_v50 }
 0x1d0   : > { %v446_v19 = vpop.xlane.xlu0 %445 }
 0x1d1   : > { %v448_v20 = vmul.f32 0.0078125, %v446_v19 }
 0x1d3   : > { %v449_v21 = vsub.f32 %v440_v13, %v448_v20 }
 0x1d5   : > { %v450_v22 = vmul.f32 %v449_v21, %v449_v21 }
 0x1d7   : > { %451 = vadd.xlane.f32.xlu0 %v450_v22 }
 0x264   : > { %v452_v46 = vpop.xlane.xlu0 %451 }
 0x265   : > { %v453_v47 = vmul.f32 0.0078125, %v452_v46 }
 0x267   : > { %v454_v48 = vadd.f32 1e-05, %v453_v47 }
 0x269   : > { %876 = vrsqrt.f32 %v454_v48 }
 0x273   : > { %v877_v51 = vpop.eup %876 }
 0x274   : > { %v456_v54 = vmul.f32 %v877_v51, %v449_v21 }
 0x276   : > { %v478_v55 = vmul.f32 %v477_v52, %v456_v54 }
 0x278   : > { %v482_v57 = vadd.f32 %v481_v56, %v478_v55 }
 0x27a   : > { %v483_v58 = vpack.c.bf16 %v482_v57, %v482_v57 }
 0x27c   : > { %807 = vmatmul.mubr.bf16.vlgmr.msra.gmra.mrb[0].mxu1 %v483_v58 }
 0x34f   : > { %v589_v60 = vpop.f32.mrb[0].mxu1 }
 0x350   : > { %v590_v61 = vadd.f32 %v739_v59, %v589_v60  ;;  %v808_v62 = vpop.f32.mrb[1].mxu1 }
 0x351   : > { %v592_v63 = vpop.f32.mrb[2].mxu1 }
 0x352   : > { %v595_v0 = vmax.f32 %v590_v61, 0.0  ;;  %v809_v1 = vpop.f32.mrb[3].mxu1 }
 0x354   : > { %878 = vtanh.f32 %v595_v0 }
 0x35e   : > { %v879_v2 = vpop.eup %878 }
 0x35f   : > { %597 = vst [vmem:[%s327_s10] sm:$0xff] %v879_v2 }
 0x360 PF: > { %p18_p3 = scmp.ge.s32.totalorder %s1038_s23, 4   ;;  %s1253_s18 = smov %s970_s19 }
 0x361   : > { %s1254_s19 = smov %s974_s20  ;;  %s1255_s20 = smov %s1048_s26 }
 0x362   : > { %s1256_s21 = smov %s1038_s23  ;;  %20 = sbr.rel (!%p18_p3) target bundleno = 5 (0x5), region = 102 }
 0x369   :  { %617 = vsyncpa [#allocation3], 1 }
 0x36a   :  { %619 = vsyncpa [#allocation3 + $0x1], 1 }
 0x36b   :  { %620 = vsyncpa [#allocation5], 1 }
 0x36c   :  { %622 = vsyncpa [#allocation5 + $0x1], 1 }

</bundles_post_ra>
